<compile_context>
chip_gen: v7x
topology: tpu7x:2x2x1
jax: 0.10.0
libtpu: 0.0.40
codegen_flags: <defaults>
</compile_context>

<pallas_src>
import math
import functools

import jax
import jax.numpy as jnp
from jax.experimental import pallas as pl
from jax.experimental.pallas import tpu as pltpu


# ----------------------------------------------------------------------------
# helpers
# ----------------------------------------------------------------------------
def _row_block(rows: int, target: int = 512) -> int:
    """Largest divisor of `rows` that is a multiple of 8 and <= target.
    Falls back to `rows` (full block == full array dim is always legal)."""
    start = (min(rows, target) // 8) * 8
    for cand in range(start, 0, -8):
        if rows % cand == 0:
            return cand
    return rows


_PARALLEL_1D = pltpu.CompilerParams(dimension_semantics=("parallel",))
_PARALLEL_2D = pltpu.CompilerParams(dimension_semantics=("parallel", "parallel"))


# ----------------------------------------------------------------------------
# Pallas kernels
# ----------------------------------------------------------------------------
def _linear_kernel(x_ref, w_ref, b_ref, o_ref):
    # x: (br, Din), w: (Din, Dout), b: (1, Dout)
    y = jnp.dot(x_ref[...], w_ref[...], preferred_element_type=jnp.float32)
    o_ref[...] = (y + b_ref[...]).astype(o_ref.dtype)


def _ffn_kernel(x_ref, w1_ref, b1_ref, w2_ref, b2_ref, o_ref):
    # position-wise FFN: conv1d(kernel_size=1) pair == two linears over d_model
    h = jnp.dot(x_ref[...], w1_ref[...], preferred_element_type=jnp.float32)
    h = jnp.maximum(h + b1_ref[...], 0.0)
    y = jnp.dot(h, w2_ref[...], preferred_element_type=jnp.float32)
    o_ref[...] = (y + b2_ref[...]).astype(o_ref.dtype)


def _add_layernorm_kernel(x_ref, res_ref, gamma_ref, beta_ref, o_ref, *, eps):
    y = x_ref[...] + res_ref[...]
    mean = jnp.mean(y, axis=-1, keepdims=True)
    var = jnp.mean((y - mean) ** 2, axis=-1, keepdims=True)
    norm = (y - mean) * jax.lax.rsqrt(var + eps)
    o_ref[...] = (norm * gamma_ref[...] + beta_ref[...]).astype(o_ref.dtype)


def _sdpa_kernel(q_ref, k_ref, v_ref, mask_ref, ctx_ref, attn_ref, *, scale):
    # one (batch, head) tile per grid point
    q = q_ref[...][0, 0]          # (S, dk)
    k = k_ref[...][0, 0]          # (Sk, dk)
    v = v_ref[...][0, 0]          # (Sk, dv)
    m = mask_ref[...][0]          # (S, Sk)  1.0 => masked

    scores = jnp.dot(q, k.T, preferred_element_type=jnp.float32) * scale
    scores = jnp.where(m > 0.5, jnp.float32(-1e9), scores)
    smax = jnp.max(scores, axis=-1, keepdims=True)
    e = jnp.exp(scores - smax)
    attn = e / jnp.sum(e, axis=-1, keepdims=True)
    ctx = jnp.dot(attn.astype(v.dtype), v, preferred_element_type=jnp.float32)

    ctx_ref[...] = ctx[None, None, :, :].astype(ctx_ref.dtype)
    attn_ref[...] = attn[None, None, :, :].astype(attn_ref.dtype)


# ----------------------------------------------------------------------------
# Pallas wrappers
# ----------------------------------------------------------------------------
def linear(x2d, w, b):
    R, Din = x2d.shape
    Dout = w.shape[1]
    br = _row_block(R)
    return pl.pallas_call(
        _linear_kernel,
        out_shape=jax.ShapeDtypeStruct((R, Dout), x2d.dtype),
        grid=(R // br,),
        in_specs=[
            pl.BlockSpec((br, Din), lambda i: (i, 0)),
            pl.BlockSpec((Din, Dout), lambda i: (0, 0)),
            pl.BlockSpec((1, Dout), lambda i: (0, 0)),
        ],
        out_specs=pl.BlockSpec((br, Dout), lambda i: (i, 0)),
        compiler_params=_PARALLEL_1D,
    )(x2d, w, b.reshape(1, Dout))


def ffn(x2d, w1, b1, w2, b2):
    R, D = x2d.shape
    Dff = w1.shape[1]
    br = _row_block(R)
    return pl.pallas_call(
        _ffn_kernel,
        out_shape=jax.ShapeDtypeStruct((R, D), x2d.dtype),
        grid=(R // br,),
        in_specs=[
            pl.BlockSpec((br, D), lambda i: (i, 0)),
            pl.BlockSpec((D, Dff), lambda i: (0, 0)),
            pl.BlockSpec((1, Dff), lambda i: (0, 0)),
            pl.BlockSpec((Dff, D), lambda i: (0, 0)),
            pl.BlockSpec((1, D), lambda i: (0, 0)),
        ],
        out_specs=pl.BlockSpec((br, D), lambda i: (i, 0)),
        compiler_params=_PARALLEL_1D,
    )(x2d, w1, b1.reshape(1, Dff), w2, b2.reshape(1, D))


def add_layernorm(x2d, res2d, gamma, beta, eps=1e-5):
    R, D = x2d.shape
    br = _row_block(R)
    return pl.pallas_call(
        functools.partial(_add_layernorm_kernel, eps=eps),
        out_shape=jax.ShapeDtypeStruct((R, D), x2d.dtype),
        grid=(R // br,),
        in_specs=[
            pl.BlockSpec((br, D), lambda i: (i, 0)),
            pl.BlockSpec((br, D), lambda i: (i, 0)),
            pl.BlockSpec((1, D), lambda i: (0, 0)),
            pl.BlockSpec((1, D), lambda i: (0, 0)),
        ],
        out_specs=pl.BlockSpec((br, D), lambda i: (i, 0)),
        compiler_params=_PARALLEL_1D,
    )(x2d, res2d, gamma.reshape(1, D), beta.reshape(1, D))


def scaled_dot_product_attention(q, k, v, mask_f, d_k):
    B, H, S, dk = q.shape
    Sk = k.shape[2]
    dv = v.shape[3]
    scale = 1.0 / math.sqrt(d_k)
    ctx, attn = pl.pallas_call(
        functools.partial(_sdpa_kernel, scale=scale),
        out_shape=(
            jax.ShapeDtypeStruct((B, H, S, dv), q.dtype),
            jax.ShapeDtypeStruct((B, H, S, Sk), jnp.float32),
        ),
        grid=(B, H),
        in_specs=[
            pl.BlockSpec((1, 1, S, dk), lambda b, h: (b, h, 0, 0)),
            pl.BlockSpec((1, 1, Sk, dk), lambda b, h: (b, h, 0, 0)),
            pl.BlockSpec((1, 1, Sk, dv), lambda b, h: (b, h, 0, 0)),
            # mask is shared across heads: indexed by batch only (no re-DMA per head)
            pl.BlockSpec((1, S, Sk), lambda b, h: (b, 0, 0)),
        ],
        out_specs=(
            pl.BlockSpec((1, 1, S, dv), lambda b, h: (b, h, 0, 0)),
            pl.BlockSpec((1, 1, S, Sk), lambda b, h: (b, h, 0, 0)),
        ),
        compiler_params=_PARALLEL_2D,
    )(q, k, v, mask_f)
    return ctx, attn


# ----------------------------------------------------------------------------
# module-level forward (Pallas pipeline + JAX reshape glue)
# ----------------------------------------------------------------------------
def multi_head_attention(Q, K, V, attn_mask, p, *, n_heads, d_k, d_v):
    B, S, D = Q.shape
    Sk = K.shape[1]
    residual2d = Q.reshape(B * S, D)

    q_s = linear(Q.reshape(B * S, D), p["wq"], p["bq"]).reshape(B, S, n_heads, d_k)
    k_s = linear(K.reshape(B * Sk, D), p["wk"], p["bk"]).reshape(B, Sk, n_heads, d_k)
    v_s = linear(V.reshape(B * Sk, D), p["wv"], p["bv"]).reshape(B, Sk, n_heads, d_v)
    q_s = q_s.transpose(0, 2, 1, 3)   # (B, H, S, dk)
    k_s = k_s.transpose(0, 2, 1, 3)
    v_s = v_s.transpose(0, 2, 1, 3)

    mask_f = attn_mask.astype(jnp.float32)      # 1.0 where masked
    ctx, attn = scaled_dot_product_attention(q_s, k_s, v_s, mask_f, d_k)

    ctx2d = ctx.transpose(0, 2, 1, 3).reshape(B * S, n_heads * d_v)
    out2d = linear(ctx2d, p["wo"], p["bo"])
    out2d = add_layernorm(out2d, residual2d, p["ln_g"], p["ln_b"])
    return out2d.reshape(B, S, D), attn


def pos_ffn(x, p):
    B, S, D = x.shape
    x2d = x.reshape(B * S, D)
    h2d = ffn(x2d, p["w1"], p["b1"], p["w2"], p["b2"])
    out2d = add_layernorm(h2d, x2d, p["ln_g"], p["ln_b"])
    return out2d.reshape(B, S, D)


def decoder_layer(dec_inputs, enc_outputs, dec_self_attn_mask, dec_enc_attn_mask,
                  params, *, n_heads, d_k, d_v):
    dec_outputs, dec_self_attn = multi_head_attention(
        dec_inputs, dec_inputs, dec_inputs, dec_self_attn_mask,
        params["self_attn"], n_heads=n_heads, d_k=d_k, d_v=d_v)
    dec_outputs, dec_enc_attn = multi_head_attention(
        dec_outputs, enc_outputs, enc_outputs, dec_enc_attn_mask,
        params["enc_attn"], n_heads=n_heads, d_k=d_k, d_v=d_v)
    dec_outputs = pos_ffn(dec_outputs, params["ffn"])
    return dec_outputs, dec_self_attn, dec_enc_attn


# ----------------------------------------------------------------------------
# parameter init (weights stored as (in, out) == transposed torch Linear)
# ----------------------------------------------------------------------------
def init_mha_params(key, d_model, n_heads, d_k, d_v):
    ks = jax.random.split(key, 8)
    s = 0.1
    return dict(
        wq=jax.random.normal(ks[0], (d_model, n_heads * d_k), jnp.float32) * s,
        bq=jax.random.normal(ks[1], (n_heads * d_k,), jnp.float32) * s,
        wk=jax.random.normal(ks[2], (d_model, n_heads * d_k), jnp.float32) * s,
        bk=jax.random.normal(ks[3], (n_heads * d_k,), jnp.float32) * s,
        wv=jax.random.normal(ks[4], (d_model, n_heads * d_v), jnp.float32) * s,
        bv=jax.random.normal(ks[5], (n_heads * d_v,), jnp.float32) * s,
        wo=jax.random.normal(ks[6], (n_heads * d_v, d_model), jnp.float32) * s,
        bo=jax.random.normal(ks[7], (d_model,), jnp.float32) * s,
        ln_g=jnp.ones((d_model,), jnp.float32),
        ln_b=jnp.zeros((d_model,), jnp.float32),
    )


def init_ffn_params(key, d_model, d_ff):
    ks = jax.random.split(key, 4)
    s = 0.1
    return dict(
        w1=jax.random.normal(ks[0], (d_model, d_ff), jnp.float32) * s,
        b1=jax.random.normal(ks[1], (d_ff,), jnp.float32) * s,
        w2=jax.random.normal(ks[2], (d_ff, d_model), jnp.float32) * s,
        b2=jax.random.normal(ks[3], (d_model,), jnp.float32) * s,
        ln_g=jnp.ones((d_model,), jnp.float32),
        ln_b=jnp.zeros((d_model,), jnp.float32),
    )


# ----------------------------------------------------------------------------
# pure-JAX reference (mirrors the PyTorch forward) for verification
# ----------------------------------------------------------------------------
def _ref_layernorm(x, g, b, eps=1e-5):
    mean = x.mean(-1, keepdims=True)
    var = ((x - mean) ** 2).mean(-1, keepdims=True)
    return (x - mean) / jnp.sqrt(var + eps) * g + b


def _ref_mha(Q, K, V, mask, p, n_heads, d_k, d_v):
    B, S, D = Q.shape
    Sk = K.shape[1]
    q = (Q.reshape(B * S, D) @ p["wq"] + p["bq"]).reshape(B, S, n_heads, d_k).transpose(0, 2, 1, 3)
    k = (K.reshape(B * Sk, D) @ p["wk"] + p["bk"]).reshape(B, Sk, n_heads, d_k).transpose(0, 2, 1, 3)
    v = (V.reshape(B * Sk, D) @ p["wv"] + p["bv"]).reshape(B, Sk, n_heads, d_v).transpose(0, 2, 1, 3)
    scores = jnp.einsum("bhqd,bhkd->bhqk", q, k) / math.sqrt(d_k)
    scores = jnp.where(mask[:, None, :, :], jnp.float32(-1e9), scores)
    attn = jax.nn.softmax(scores, axis=-1)
    ctx = jnp.einsum("bhqk,bhkd->bhqd", attn, v)
    ctx = ctx.transpose(0, 2, 1, 3).reshape(B, S, n_heads * d_v)
    out = ctx @ p["wo"] + p["bo"]
    return _ref_layernorm(out + Q, p["ln_g"], p["ln_b"]), attn


def _ref_ffn(x, p):
    h = jnp.maximum(x @ p["w1"] + p["b1"], 0.0)
    out = h @ p["w2"] + p["b2"]
    return _ref_layernorm(out + x, p["ln_g"], p["ln_b"])


def decoder_layer_ref(dec_inputs, enc_outputs, self_mask, enc_mask, params,
                      n_heads, d_k, d_v):
    y, sa = _ref_mha(dec_inputs, dec_inputs, dec_inputs, self_mask,
                     params["self_attn"], n_heads, d_k, d_v)
    y, ea = _ref_mha(y, enc_outputs, enc_outputs, enc_mask,
                     params["enc_attn"], n_heads, d_k, d_v)
    y = _ref_ffn(y, params["ffn"])
    return y, sa, ea


# ----------------------------------------------------------------------------
if __name__ == "__main__":
    B, T, S_src = 2, 8, 8
    d_model, n_heads, d_k, d_v, d_ff = 32, 4, 8, 8, 64

    root = jax.random.PRNGKey(0)
    k_in, k_enc, k_p1, k_p2, k_pf = jax.random.split(root, 5)

    dec_inputs = jax.random.normal(k_in, (B, T, d_model), jnp.float32)
    enc_outputs = jax.random.normal(k_enc, (B, S_src, d_model), jnp.float32)

    # causal self-attention mask (True == masked) + a padded cross-attn mask
    causal = jnp.triu(jnp.ones((T, T), dtype=bool), k=1)
    dec_self_attn_mask = jnp.broadcast_to(causal, (B, T, T))
    dec_enc_attn_mask = jnp.zeros((B, T, S_src), dtype=bool).at[1, :, -2:].set(True)

    params = dict(
        self_attn=init_mha_params(k_p1, d_model, n_heads, d_k, d_v),
        enc_attn=init_mha_params(k_p2, d_model, n_heads, d_k, d_v),
        ffn=init_ffn_params(k_pf, d_model, d_ff),
    )

    dec_out, self_attn, enc_attn = decoder_layer(
        dec_inputs, enc_outputs, dec_self_attn_mask, dec_enc_attn_mask,
        params, n_heads=n_heads, d_k=d_k, d_v=d_v)
    dec_out = jax.block_until_ready(dec_out)
    self_attn = jax.block_until_ready(self_attn)
    enc_attn = jax.block_until_ready(enc_attn)

    ref_out, ref_sa, ref_ea = decoder_layer_ref(
        dec_inputs, enc_outputs, dec_self_attn_mask, dec_enc_attn_mask,
        params, n_heads, d_k, d_v)

    assert dec_out.shape == (B, T, d_model)
    assert self_attn.shape == (B, n_heads, T, T)
    assert enc_attn.shape == (B, n_heads, T, S_src)
    assert jnp.allclose(dec_out, ref_out, atol=2e-4, rtol=2e-4)
    assert jnp.allclose(self_attn, ref_sa, atol=2e-4, rtol=2e-4)
    assert jnp.allclose(enc_attn, ref_ea, atol=2e-4, rtol=2e-4)

    print("KERNEL_OK")
</pallas_src>

<mosaic_0001>
module attributes {stable_mosaic.version = 11 : i64} {
  func.func @_linear_kernel(%arg0: i32, %arg1: memref<16x32xf32, #tpu.memory_space<vmem>>, %arg2: memref<32x32xf32, #tpu.memory_space<vmem>>, %arg3: memref<1x32xf32, #tpu.memory_space<vmem>>, %arg4: memref<16x32xf32, #tpu.memory_space<vmem>>) attributes {dimension_semantics = [#tpu.dimension_semantics<parallel>], iteration_bounds = array<i64: 1>, scalar_prefetch = 0 : i64, scratch_operands = 0 : i64, tpu.core_type = #tpu.core_type<tc>, window_params = [{transform_indices = @transform_0, window_bounds = array<i64: 16, 32>}, {pipeline_mode = #tpu.pipeline_mode<synchronous>, transform_indices = @transform_1, window_bounds = array<i64: 32, 32>}, {pipeline_mode = #tpu.pipeline_mode<synchronous>, transform_indices = @transform_2, window_bounds = array<i64: 1, 32>}, {transform_indices = @transform_3, window_bounds = array<i64: 16, 32>}]} {
    %c0 = arith.constant 0 : index
    %c0_0 = arith.constant 0 : index
    %0 = vector.load %arg1[%c0, %c0_0] : memref<16x32xf32, #tpu.memory_space<vmem>>, vector<16x32xf32>
    %c0_1 = arith.constant 0 : index
    %c0_2 = arith.constant 0 : index
    %1 = vector.load %arg2[%c0_1, %c0_2] : memref<32x32xf32, #tpu.memory_space<vmem>>, vector<32x32xf32>
    %cst = arith.constant dense<0.000000e+00> : vector<16x32xf32>
    %2 = tpu.matmul %0, %1, %cst {dimension_numbers = #tpu.dot_dimension_numbers<[1], [0], [0], [1], [0, 0, 1, 1], [], []>} : vector<16x32xf32>, vector<32x32xf32>, vector<16x32xf32> -> vector<16x32xf32>
    %c0_3 = arith.constant 0 : index
    %c0_4 = arith.constant 0 : index
    %3 = vector.load %arg3[%c0_3, %c0_4] : memref<1x32xf32, #tpu.memory_space<vmem>>, vector<1x32xf32>
    %4 = vector.broadcast %3 : vector<1x32xf32> to vector<16x32xf32>
    %5 = arith.addf %2, %4 : vector<16x32xf32>
    %c0_5 = arith.constant 0 : index
    %c0_6 = arith.constant 0 : index
    %6 = vector.load %arg4[%c0_5, %c0_6] : memref<16x32xf32, #tpu.memory_space<vmem>>, vector<16x32xf32>
    tpu.vector_store %arg4[%c0_5, %c0_6], %5 {strides = array<i32>} : memref<16x32xf32, #tpu.memory_space<vmem>>, vector<16x32xf32>,
    return
  }
  func.func @transform_0(%arg0: i32) -> (i32, i32) {
    %c0_i32 = arith.constant 0 : i32
    %c0_i32_0 = arith.constant 0 : i32
    return %arg0, %c0_i32 : i32, i32
  }
  func.func @transform_1(%arg0: i32) -> (i32, i32) {
    %c0_i32 = arith.constant 0 : i32
    %c0_i32_0 = arith.constant 0 : i32
    %c0_i32_1 = arith.constant 0 : i32
    return %c0_i32, %c0_i32_0 : i32, i32
  }
  func.func @transform_2(%arg0: i32) -> (i32, i32) {
    %c0_i32 = arith.constant 0 : i32
    %c0_i32_0 = arith.constant 0 : i32
    %c0_i32_1 = arith.constant 0 : i32
    return %c0_i32, %c0_i32_0 : i32, i32
  }
  func.func @transform_3(%arg0: i32) -> (i32, i32) {
    %c0_i32 = arith.constant 0 : i32
    %c0_i32_0 = arith.constant 0 : i32
    return %arg0, %c0_i32 : i32, i32
  }
}

</mosaic_0001>

<bundles_post_ra>
// kernel: tpu_custom_call.1
= control target key start
LH: loop header
LB: loop body
LE: loop exit
PB: predicated region body
PF: predicated region fallthrough
CT: control target
= control target key end

     0   :  { %8 = vsyncpa [#allocation3], 0  ;;  %s340_s0 = inlined_call_operand.hbm [shape: f32[16,32], index: 0, kind: input, shape index: {}]   ;;  %s341_s1 = inlined_call_operand.hbm [shape: f32[32,32], index: 1, kind: input, shape index: {}]   ;;  %s342_s2 = inlined_call_operand.vmem [shape: f32[1,32], index: 2, kind: input, shape index: {}]   ;;  %s343_s3 = inlined_call_operand.hbm [shape: f32[16,32], index: 3, kind: output, shape index: {}]  }
   0x1   :  { %9 = vsyncpa [#allocation6], 0 }
   0x2   :  { %10 = vsyncpa [#allocation4], 0  ;;  %s263_s12 = smov [#allocation2]   ;;  %s191_s16 = scalar_lea.hbm %s340_s0, 256 }
   0x3   :  { %s16_s13 = sshll.u32 %s263_s12, 4  ;;  %p192_p0 = scmp.ne.s32.totalorder %s340_s0, %s191_s16  ;;  %s17_s13 = int_to_ptr.vmem [resolvable:$true] %s16_s13 }
   0x4   :  { %p195_p1 = scmp.lt.u32.totalorder %s191_s16, %s340_s0 }
   0x6   :  { %p197_p2 = pnand %p195_p1, %p192_p0 }
   0x8   :  { %200 = shalt.err (!%p197_p2)
}
   0x9   :  { %s201_s21 = scalar_lea.vmem %s17_s13, 256  ;;  %p206_p4 = scmp.lt.s32.totalorder %s17_s13, %s17_s13 }
   0xa   :  { %p202_p3 = scmp.ne.s32.totalorder %s17_s13, %s201_s21  ;;  %p207_p5 = scmp.lt.s32.totalorder %s201_s21, %s201_s21 }
   0xc   :  { %p208_p6 = por %p207_p5, %p206_p4 }
   0xe   :  { %p209_p7 = pnand %p208_p6, %p202_p3 }
  0x10   :  { %212 = shalt.err (!%p209_p7)
}
  0x11   :  { %s264_s22 = smov 128   ;;  %s265_s23 = smov 8  }
  0x12   :  { %22 = dma.hbm_to_vmem [thread:$0]  %s340_s0, 256, %s17_s13, [#allocation3], %s264_s22, %s264_s22, %s265_s23  }
  0x13   :  { %s266_s26 = smov [#allocation5]   ;;  %s213_s30 = scalar_lea.hbm %s341_s1, 512 }
  0x14   :  { %s28_s27 = sshll.u32 %s266_s26, 4  ;;  %p214_p8 = scmp.ne.s32.totalorder %s341_s1, %s213_s30  ;;  %s29_s27 = int_to_ptr.vmem [resolvable:$true] %s28_s27 }
  0x15   :  { %p217_p9 = scmp.lt.u32.totalorder %s213_s30, %s341_s1 }
  0x17   :  { %p219_p10 = pnand %p217_p9, %p214_p8 }
  0x19   :  { %222 = shalt.err (!%p219_p10)
}
  0x1a   :  { %s223_s8 = scalar_lea.vmem %s29_s27, 512  ;;  %p228_p12 = scmp.lt.s32.totalorder %s29_s27, %s29_s27 }
  0x1b   :  { %p224_p11 = scmp.ne.s32.totalorder %s29_s27, %s223_s8  ;;  %p229_p13 = scmp.lt.s32.totalorder %s223_s8, %s223_s8 }
  0x1d   :  { %p230_p0 = por %p229_p13, %p228_p12 }
  0x1f   :  { %p231_p1 = pnand %p230_p0, %p224_p11 }
  0x21   :  { %234 = shalt.err (!%p231_p1)
}
  0x22   :  { %34 = dma.hbm_to_vmem [thread:$0]  %s341_s1, 512, %s29_s27, [#allocation6], %s264_s22, %s264_s22, %s265_s23  }
  0x23   :  { %257 = dma.done.wait [#allocation3], 256  }
  0x24   :  { %258 = vsyncadd [#allocation3], 4294967040 }
  0x25   :  { %259 = dma.done.wait [#allocation6], 512  }
  0x26   :  { %260 = vsyncadd [#allocation6], 4294966784  ;;  %vm56_vm0 = vcmask 261120   ;;  %v45_v0 = vld [vmem:[#allocation5] sm:$0xff]  ;;  %v46_v1 = vld [vmem:[#allocation5 + $0x8] sm:$0xff]  ;;  %s267_s11 = smov [#allocation7]  }
  0x27   :  { %v47_v2 = vld [vmem:[#allocation5 + $0x10] sm:$0xff]  ;;  %v178_v3 = vpack.c.bf16 %v46_v1, %v45_v0  ;;  %v48_v4 = vld [vmem:[#allocation5 + $0x18] sm:$0xff]  ;;  %s145_s12 = sshll.u32 %s267_s11, 4  ;;  %s146_s12 = int_to_ptr.vmem [resolvable:$true] %s145_s12 }
  0x28   :  { %v43_v5 = vld [vmem:[#allocation2] sm:$0xff]  ;;  %v182_v6 = vpack.c.bf16 %v48_v4, %v47_v2  ;;  %v44_v7 = vld [vmem:[#allocation2 + $0x8] sm:$0xff]  ;;  %s235_s13 = scalar_lea.vmem %s146_s12, 256  ;;  %p240_p3 = scmp.lt.s32.totalorder %s146_s12, %s146_s12 }
  0x29   :  { %175 = vmatprep.mubr.msk.f32.mxu0 %vm56_vm0, %v43_v5  ;;  %179 = vmatprep.subr.bf16.mxu0 %v178_v3  ;;  %v158_v8 = vld [vmem:[%s342_s2] ss:$0 sm:$0xff]  ;;  %p236_p2 = scmp.ne.s32.totalorder %s146_s12, %s235_s13  ;;  %p241_p4 = scmp.lt.s32.totalorder %s235_s13, %s235_s13 }
  0x2a   :  { %181 = vmatpush3.bf16.msra.mxu0 %v178_v3 }
  0x2b   :  { %183 = vmatprep.subr.bf16.mxu0 %v182_v6  ;;  %p242_p5 = por %p241_p4, %p240_p3 }
  0x2d   :  { %p243_p6 = pnand %p242_p5, %p236_p2 }
  0x2e   :  { %185 = vmatpush3.bf16.msra.mxu0 %v182_v6 }
  0x31   :  { %176 = vmatmul.mubr.msk.f32.vlgmr.msra.gmra.mrb[0].mxu0 %vm56_vm0, %v44_v7 }
 0x104   :  { %v177_v9 = vpop.f32.mrb[0].mxu0 }
 0x105   :  { %v135_v10 = vadd.f32 %v177_v9, %v158_v8  ;;  %v129_v11 = vpop.f32.mrb[1].mxu0 }
 0x106   :  { %v130_v12 = vadd.f32 %v158_v8, %v129_v11 }
 0x107   :  { %139 = vst.msk [vmem:[#allocation7 + $0x8] sm:$0xff] %vm56_vm0, %v135_v10 }
 0x108   :  { %138 = vst.msk [vmem:[#allocation7] sm:$0xff] %vm56_vm0, %v130_v12 }
 0x109   :  { %246 = shalt.err (!%p243_p6)
}
 0x10a   :  { %s247_s15 = scalar_lea.hbm %s343_s3, 256 }
 0x10b   :  { %p248_p7 = scmp.ne.s32.totalorder %s343_s3, %s247_s15  ;;  %p251_p8 = scmp.lt.u32.totalorder %s247_s15, %s343_s3 }
 0x10d   :  { %p253_p9 = pnand %p251_p8, %p248_p7 }
 0x10f   :  { %256 = shalt.err (!%p253_p9)
}
 0x110   :  { %151 = dma.vmem_to_hbm [thread:$0]  %s146_s12, 256, %s343_s3, [#allocation4], %s264_s22, %s264_s22, %s265_s23  }
 0x111   :  { %261 = dma.done.wait [#allocation4], 256  }
 0x112   :  { %262 = vsyncadd [#allocation4], 4294967040 }
 0x113   :  { %155 = vsyncpa [#allocation3], 1 }
 0x114   :  { %156 = vsyncpa [#allocation6], 1 }
 0x115   :  { %157 = vsyncpa [#allocation4], 1 }

</bundles_post_ra>
